<compile_context>
chip_gen: v7x
topology: tpu7x:2x2x1
jax: 0.10.0
libtpu: 0.0.40
codegen_flags: <defaults>
</compile_context>

<pallas_src>
import math
from functools import partial

import jax
import jax.numpy as jnp
from jax.experimental import pallas as pl
from jax.experimental.pallas import tpu as pltpu

_BN_EPS = 1e-5
_VMEM_LIMIT = 32 * 1024 * 1024

# Reduced-depth instantiation of the generic VideoResNet:
#   block = BasicBlock (expansion=1), conv_makers = Conv3DSimple everywhere,
#   layers = [1, 1, 1, 1], stem = BasicStem, num_classes = 400.
STAGES = (
    # (planes, num_blocks, stride)
    (64, 1, 1),
    (128, 1, 2),
    (256, 1, 2),
    (512, 1, 2),
)
NUM_CLASSES = 400


def _round_up(x, m):
    return (x + m - 1) // m * m


def _pick_tile(dim_pad, max_t, step=128):
    """Largest multiple of `step` that divides dim_pad and is <= max_t
    (or dim_pad itself if it already fits)."""
    if dim_pad <= max_t:
        return dim_pad
    best = step
    t = step
    while t <= max_t:
        if dim_pad % t == 0:
            best = t
        t += step
    return best


# ---------------------------------------------------------------------------
# Pallas kernels
# ---------------------------------------------------------------------------
def _matmul_bn_kernel(*refs, relu, has_residual):
    """out = act((A @ B) + bias [+ residual]); K-reduction over grid axis 2.

    A/B tiles are bf16 (MXU native); accumulation and epilogue are f32.
    """
    if has_residual:
        a_ref, b_ref, c_ref, r_ref, o_ref, acc_ref = refs
    else:
        a_ref, b_ref, c_ref, o_ref, acc_ref = refs
        r_ref = None

    k = pl.program_id(2)

    @pl.when(k == 0)
    def _():
        acc_ref[...] = jnp.zeros_like(acc_ref)

    acc_ref[...] += jnp.dot(a_ref[...], b_ref[...],
                            preferred_element_type=jnp.float32)

    @pl.when(k == pl.num_programs(2) - 1)
    def _():
        y = acc_ref[...] + c_ref[...]
        if has_residual:
            y = y + r_ref[...].astype(jnp.float32)
        if relu:
            y = jnp.maximum(y, 0.0)
        o_ref[...] = y.astype(o_ref.dtype)


def _pool_fc_kernel(x_ref, w_ref, b_ref, o_ref, acc_ref, *, inv_s):
    """AdaptiveAvgPool3d((1,1,1)) + flatten + Linear, fused.

    The spatial axis S is tiled over grid axis 0 with an f32 running sum.
    """
    si = pl.program_id(0)

    @pl.when(si == 0)
    def _():
        acc_ref[...] = jnp.zeros_like(acc_ref)

    acc_ref[...] += jnp.sum(x_ref[...].astype(jnp.float32), axis=1)

    @pl.when(si == pl.num_programs(0) - 1)
    def _():
        pooled = (acc_ref[...] * inv_s).astype(w_ref.dtype)
        o_ref[...] = (jnp.dot(pooled, w_ref[...],
                              preferred_element_type=jnp.float32)
                      + b_ref[...])


# ---------------------------------------------------------------------------
# Pallas wrappers
# ---------------------------------------------------------------------------
def fused_matmul_bn(A, B, bias, residual=None, relu=True):
    """A:[M,K] @ B:[K,N] with fused per-column bias, optional residual, ReLU."""
    M, K = A.shape
    _, N = B.shape

    # --- tile selection -----------------------------------------------------
    max_tm = 256
    if M <= max_tm:
        tm = _round_up(M, 8)
        M_pad = tm
    else:
        tm = max_tm
        M_pad = _round_up(M, tm)

    small_m = M_pad <= 64                       # deep layers: M collapses
    N_pad = _round_up(N, 128)
    tn = _pick_tile(N_pad, 512 if small_m else 256)

    K_pad = _round_up(K, 128)                   # pad K to 128, not to tk
    tk = _pick_tile(K_pad, 2048 if small_m else 512)

    # --- operand prep (bf16 MXU inputs, f32 epilogue operands) ---------------
    A_p = jnp.pad(A, ((0, M_pad - M), (0, K_pad - K))).astype(jnp.bfloat16)
    B_p = jnp.pad(B, ((0, K_pad - K), (0, N_pad - N))).astype(jnp.bfloat16)
    c_p = jnp.pad(bias, (0, N_pad - N)).reshape(1, N_pad).astype(jnp.float32)

    in_specs = [
        pl.BlockSpec((tm, tk), lambda i, j, k: (i, k)),
        pl.BlockSpec((tk, tn), lambda i, j, k: (k, j)),
        pl.BlockSpec((1, tn), lambda i, j, k: (0, j)),
    ]
    inputs = [A_p, B_p, c_p]

    has_residual = residual is not None
    if has_residual:
        r_p = jnp.pad(residual,
                      ((0, M_pad - M), (0, N_pad - N))).astype(jnp.bfloat16)
        in_specs.append(pl.BlockSpec((tm, tn), lambda i, j, k: (i, j)))
        inputs.append(r_p)

    grid = (M_pad // tm, N_pad // tn, K_pad // tk)

    out = pl.pallas_call(
        partial(_matmul_bn_kernel, relu=relu, has_residual=has_residual),
        out_shape=jax.ShapeDtypeStruct((M_pad, N_pad), jnp.bfloat16),
        grid_spec=pltpu.PrefetchScalarGridSpec(
            num_scalar_prefetch=0,
            grid=grid,
            in_specs=in_specs,
            out_specs=pl.BlockSpec((tm, tn), lambda i, j, k: (i, j)),
            scratch_shapes=[pltpu.VMEM((tm, tn), jnp.float32)],
        ),
        compiler_params=pltpu.CompilerParams(
            dimension_semantics=("parallel", "parallel", "arbitrary"),
            vmem_limit_bytes=_VMEM_LIMIT,
        ),
    )(*inputs)
    return out[:M, :N]


def conv3d_bn(x, w, bn_scale, bn_bias, stride, padding, relu=True,
              residual=None):
    """x: [N, D, H, W, Cin] (bf16); w: [kt, kh, kw, Cin, Cout] (f32).

    BN is folded: scale into weight columns, bias added in the kernel epilogue.
    """
    N, D, H, W, Cin = x.shape
    kt, kh, kw, _, Cout = w.shape
    st, sh, sw = stride
    pt, ph, pw = padding
    Do = (D + 2 * pt - kt) // st + 1
    Ho = (H + 2 * ph - kh) // sh + 1
    Wo = (W + 2 * pw - kw) // sw + 1

    # im2col in bf16 (data movement only; compute happens in the Pallas kernel)
    xp = jnp.pad(x, ((0, 0), (pt, pt), (ph, ph), (pw, pw), (0, 0)))
    patches = []
    for dt in range(kt):
        for dh in range(kh):
            for dw in range(kw):
                patches.append(
                    xp[:, dt:dt + Do * st:st,
                          dh:dh + Ho * sh:sh,
                          dw:dw + Wo * sw:sw, :])
    A = jnp.concatenate(patches, axis=-1).reshape(
        N * Do * Ho * Wo, kt * kh * kw * Cin)

    # Fold BN scale into the weight columns (standard inference BN folding).
    Bmat = w.reshape(kt * kh * kw * Cin, Cout) * bn_scale[None, :]
    res = None if residual is None else residual.reshape(N * Do * Ho * Wo, Cout)

    out = fused_matmul_bn(A, Bmat, bn_bias, residual=res, relu=relu)
    return out.reshape(N, Do, Ho, Wo, Cout)


def pool_fc(x, w, b):
    """x: [N, S, C] (bf16) with S = D*H*W.  Returns f32 [N, num_classes]."""
    N, S, C = x.shape
    NC = w.shape[1]
    N_pad = _round_up(N, 8)
    NC_pad = _round_up(NC, 128)

    if S <= 512:
        ts, S_pad = S, S
    else:
        ts = 512
        S_pad = _round_up(S, ts)

    x_p = jnp.pad(x, ((0, N_pad - N), (0, S_pad - S), (0, 0))).astype(jnp.bfloat16)
    w_p = jnp.pad(w, ((0, 0), (0, NC_pad - NC))).astype(jnp.bfloat16)
    b_p = jnp.pad(b, (0, NC_pad - NC)).reshape(1, NC_pad).astype(jnp.float32)

    out = pl.pallas_call(
        partial(_pool_fc_kernel, inv_s=1.0 / S),
        out_shape=jax.ShapeDtypeStruct((N_pad, NC_pad), jnp.float32),
        grid_spec=pltpu.PrefetchScalarGridSpec(
            num_scalar_prefetch=0,
            grid=(S_pad // ts,),
            in_specs=[
                pl.BlockSpec((N_pad, ts, C), lambda s: (0, s, 0)),
                pl.BlockSpec((C, NC_pad), lambda s: (0, 0)),
                pl.BlockSpec((1, NC_pad), lambda s: (0, 0)),
            ],
            out_specs=pl.BlockSpec((N_pad, NC_pad), lambda s: (0, 0)),
            scratch_shapes=[pltpu.VMEM((N_pad, C), jnp.float32)],
        ),
        compiler_params=pltpu.CompilerParams(
            dimension_semantics=("arbitrary",),
            vmem_limit_bytes=_VMEM_LIMIT,
        ),
    )(x_p, w_p, b_p)
    return out[:N, :NC]


# ---------------------------------------------------------------------------
# Parameters (deterministic, matching the PyTorch _initialize_weights)
# ---------------------------------------------------------------------------
def _conv_weight(key, cin, cout, ksize):
    kt, kh, kw = ksize
    fan_out = cout * kt * kh * kw
    std = math.sqrt(2.0 / fan_out)            # kaiming_normal_, fan_out, relu
    return std * jax.random.normal(key, (kt, kh, kw, cin, cout), jnp.float32)


def _bn_affine(c):
    # BatchNorm3d folded to inference-mode affine with default init:
    # weight=1, bias=0, running_mean=0, running_var=1 -> y = x / sqrt(1+eps)
    # TODO(synk): training-mode batch statistics are not computed.
    scale = jnp.full((c,), 1.0 / math.sqrt(1.0 + _BN_EPS), jnp.float32)
    bias = jnp.zeros((c,), jnp.float32)
    return scale, bias


def build_params(key):
    keys = iter(jax.random.split(key, 64))
    params = {}
    params["stem_w"] = _conv_weight(next(keys), 3, 64, (3, 7, 7))
    params["stem_s"], params["stem_b"] = _bn_affine(64)

    inplanes = 64
    for li, (planes, nblocks, stride) in enumerate(STAGES):
        for bi in range(nblocks):
            s = stride if bi == 0 else 1
            pre = f"l{li}_b{bi}_"
            params[pre + "w1"] = _conv_weight(next(keys), inplanes, planes, (3, 3, 3))
            params[pre + "bn1_s"], params[pre + "bn1_b"] = _bn_affine(planes)
            params[pre + "w2"] = _conv_weight(next(keys), planes, planes, (3, 3, 3))
            params[pre + "bn2_s"], params[pre + "bn2_b"] = _bn_affine(planes)
            if s != 1 or inplanes != planes:
                params[pre + "dsw"] = _conv_weight(next(keys), inplanes, planes, (1, 1, 1))
                params[pre + "ds_s"], params[pre + "ds_b"] = _bn_affine(planes)
            inplanes = planes

    params["fc_w"] = 0.01 * jax.random.normal(next(keys), (512, NUM_CLASSES),
                                              jnp.float32)   # Linear: N(0, 0.01)
    params["fc_b"] = jnp.zeros((NUM_CLASSES,), jnp.float32)
    return params


# ---------------------------------------------------------------------------
# Forward pass (stem -> layer1..4 -> avgpool -> fc)
# ---------------------------------------------------------------------------
def video_resnet_forward(x_ncdhw, params):
    # NCDHW -> NDHWC, bf16 activations throughout (f32 accumulation in-kernel)
    x = jnp.transpose(x_ncdhw, (0, 2, 3, 4, 1)).astype(jnp.bfloat16)

    # stem: Conv3d(3,64,(3,7,7),stride=(1,2,2),pad=(1,3,3)) + BN + ReLU
    x = conv3d_bn(x, params["stem_w"], params["stem_s"], params["stem_b"],
                  stride=(1, 2, 2), padding=(1, 3, 3), relu=True)

    inplanes = 64
    for li, (planes, nblocks, stride) in enumerate(STAGES):
        for bi in range(nblocks):
            s = stride if bi == 0 else 1
            pre = f"l{li}_b{bi}_"
            identity = x
            out = conv3d_bn(x, params[pre + "w1"],
                            params[pre + "bn1_s"], params[pre + "bn1_b"],
                            stride=(s, s, s), padding=(1, 1, 1), relu=True)
            if s != 1 or inplanes != planes:
                identity = conv3d_bn(x, params[pre + "dsw"],
                                     params[pre + "ds_s"], params[pre + "ds_b"],
                                     stride=(s, s, s), padding=(0, 0, 0),
                                     relu=False)
            # conv2 + BN fused with residual add and final ReLU
            x = conv3d_bn(out, params[pre + "w2"],
                          params[pre + "bn2_s"], params[pre + "bn2_b"],
                          stride=(1, 1, 1), padding=(1, 1, 1),
                          relu=True, residual=identity)
            inplanes = planes

    N, D, H, W, C = x.shape
    return pool_fc(x.reshape(N, D * H * W, C), params["fc_w"], params["fc_b"])


if __name__ == "__main__":
    key = jax.random.PRNGKey(0)
    pkey, xkey = jax.random.split(key)
    params = build_params(pkey)

    # Small video batch: N=2, C=3 (RGB), T=4, H=W=16  (PyTorch NCDHW layout)
    x = jax.random.normal(xkey, (2, 3, 4, 16, 16), jnp.float32)

    logits = video_resnet_forward(x, params)
    logits = jax.block_until_ready(logits)
    assert logits.shape == (2, NUM_CLASSES), logits.shape
    assert bool(jnp.all(jnp.isfinite(logits)))
    print("KERNEL_OK")
</pallas_src>

<mosaic_0001>
module attributes {stable_mosaic.version = 11 : i64} {
  func.func @_matmul_bn_kernel(%arg0: i32, %arg1: i32, %arg2: i32, %arg3: memref<256x512xbf16, #tpu.memory_space<vmem>>, %arg4: memref<512x128xbf16, #tpu.memory_space<vmem>>, %arg5: memref<1x128xf32, #tpu.memory_space<vmem>>, %arg6: memref<256x128xbf16, #tpu.memory_space<vmem>>, %arg7: memref<256x128xf32, #tpu.memory_space<vmem>>) attributes {dimension_semantics = [#tpu.dimension_semantics<parallel>, #tpu.dimension_semantics<parallel>, #tpu.dimension_semantics<arbitrary>], iteration_bounds = array<i64: 2, 1, 1>, scalar_prefetch = 0 : i64, scratch_operands = 1 : i64, tpu.core_type = #tpu.core_type<tc>, window_params = [{transform_indices = @transform_0, window_bounds = array<i64: 256, 512>}, {transform_indices = @transform_1, window_bounds = array<i64: 512, 128>}, {transform_indices = @transform_2, window_bounds = array<i64: 1, 128>}, {transform_indices = @transform_3, window_bounds = array<i64: 256, 128>}]} {
    %c0_i32 = arith.constant 0 : i32
    %0 = arith.cmpi eq, %arg2, %c0_i32 : i32
    %1 = arith.extui %0 : i1 to i32
    %c0_i32_0 = arith.constant 0 : i32
    %2 = arith.cmpi ne, %1, %c0_i32_0 : i32
    scf.if %2 {
      %cst_10 = arith.constant 0.000000e+00 : f32
      %12 = vector.broadcast %cst_10 : f32 to vector<256x128xf32>
      %c0_11 = arith.constant 0 : index
      %c0_12 = arith.constant 0 : index
      %13 = vector.load %arg7[%c0_11, %c0_12] : memref<256x128xf32, #tpu.memory_space<vmem>>, vector<256x128xf32>
      tpu.vector_store %arg7[%c0_11, %c0_12], %12 {strides = array<i32>} : memref<256x128xf32, #tpu.memory_space<vmem>>, vector<256x128xf32>,
    } else {
    }
    %c0 = arith.constant 0 : index
    %c0_1 = arith.constant 0 : index
    %3 = vector.load %arg7[%c0, %c0_1] : memref<256x128xf32, #tpu.memory_space<vmem>>, vector<256x128xf32>
    %c0_2 = arith.constant 0 : index
    %c0_3 = arith.constant 0 : index
    %4 = vector.load %arg3[%c0_2, %c0_3] : memref<256x512xbf16, #tpu.memory_space<vmem>>, vector<256x512xbf16>
    %c0_4 = arith.constant 0 : index
    %c0_5 = arith.constant 0 : index
    %5 = vector.load %arg4[%c0_4, %c0_5] : memref<512x128xbf16, #tpu.memory_space<vmem>>, vector<512x128xbf16>
    %cst = arith.constant dense<0.000000e+00> : vector<256x128xf32>
    %6 = tpu.matmul %4, %5, %cst {dimension_numbers = #tpu.dot_dimension_numbers<[1], [0], [0], [1], [0, 0, 1, 1], [], []>} : vector<256x512xbf16>, vector<512x128xbf16>, vector<256x128xf32> -> vector<256x128xf32>
    %7 = arith.addf %3, %6 : vector<256x128xf32>
    %c0_6 = arith.constant 0 : index
    %c0_7 = arith.constant 0 : index
    %8 = vector.load %arg7[%c0_6, %c0_7] : memref<256x128xf32, #tpu.memory_space<vmem>>, vector<256x128xf32>
    tpu.vector_store %arg7[%c0_6, %c0_7], %7 {strides = array<i32>} : memref<256x128xf32, #tpu.memory_space<vmem>>, vector<256x128xf32>,
    %c0_i32_8 = arith.constant 0 : i32
    %9 = arith.cmpi eq, %arg2, %c0_i32_8 : i32
    %10 = arith.extui %9 : i1 to i32
    %c0_i32_9 = arith.constant 0 : i32
    %11 = arith.cmpi ne, %10, %c0_i32_9 : i32
    scf.if %11 {
      %c0_10 = arith.constant 0 : index
      %c0_11 = arith.constant 0 : index
      %12 = vector.load %arg7[%c0_10, %c0_11] : memref<256x128xf32, #tpu.memory_space<vmem>>, vector<256x128xf32>
      %c0_12 = arith.constant 0 : index
      %c0_13 = arith.constant 0 : index
      %13 = vector.load %arg5[%c0_12, %c0_13] : memref<1x128xf32, #tpu.memory_space<vmem>>, vector<1x128xf32>
      %14 = vector.broadcast %13 : vector<1x128xf32> to vector<256x128xf32>
      %15 = arith.addf %12, %14 : vector<256x128xf32>
      %cst_14 = arith.constant 0.000000e+00 : f32
      %16 = vector.broadcast %cst_14 : f32 to vector<256x128xf32>
      %17 = arith.maximumf %15, %16 : vector<256x128xf32>
      %18 = arith.truncf %17 : vector<256x128xf32> to vector<256x128xbf16>
      %c0_15 = arith.constant 0 : index
      %c0_16 = arith.constant 0 : index
      %19 = vector.load %arg6[%c0_15, %c0_16] : memref<256x128xbf16, #tpu.memory_space<vmem>>, vector<256x128xbf16>
      tpu.vector_store %arg6[%c0_15, %c0_16], %18 {strides = array<i32>} : memref<256x128xbf16, #tpu.memory_space<vmem>>, vector<256x128xbf16>,
    } else {
    }
    return
  }
  func.func @transform_0(%arg0: i32, %arg1: i32, %arg2: i32) -> (i32, i32) {
    %c0_i32 = arith.constant 0 : i32
    return %arg0, %arg2 : i32, i32
  }
  func.func @transform_1(%arg0: i32, %arg1: i32, %arg2: i32) -> (i32, i32) {
    %c0_i32 = arith.constant 0 : i32
    return %arg2, %arg1 : i32, i32
  }
  func.func @transform_2(%arg0: i32, %arg1: i32, %arg2: i32) -> (i32, i32) {
    %c0_i32 = arith.constant 0 : i32
    %c0_i32_0 = arith.constant 0 : i32
    return %c0_i32, %arg1 : i32, i32
  }
  func.func @transform_3(%arg0: i32, %arg1: i32, %arg2: i32) -> (i32, i32) {
    %c0_i32 = arith.constant 0 : i32
    return %arg0, %arg1 : i32, i32
  }
}

</mosaic_0001>

<bundles_post_ra>
// kernel: tpu_custom_call.1
= control target key start
LH: loop header
LB: loop body
LE: loop exit
PB: predicated region body
PF: predicated region fallthrough
CT: control target
= control target key end

     0   :  { %8 = vsyncpa [#allocation4], 0  ;;  %s2976_s0 = inlined_call_operand.hbm [shape: bf16[512,512], index: 0, kind: input, shape index: {}]   ;;  %s2977_s1 = inlined_call_operand.hbm [shape: bf16[512,128], index: 1, kind: input, shape index: {}]   ;;  %s2978_s2 = inlined_call_operand.vmem [shape: f32[1,128], index: 2, kind: input, shape index: {}]   ;;  %s2979_s3 = inlined_call_operand.hbm [shape: bf16[512,128], index: 3, kind: output, shape index: {}]  }
   0x1   :  { %10 = vsyncpa [#allocation4 + $0x1], 0 }
   0x2   :  { %11 = vsyncpa [#allocation7], 0 }
   0x3   :  { %12 = vsyncpa [#allocation5], 0 }
   0x4   :  { %14 = vsyncpa [#allocation5 + $0x1], 0  ;;  %s2634_s12 = smov 0   ;;  %s2636_s13 = smov 0  }
   0x5   :  { %s2638_s14 = smov 0   ;;  %s2640_s15 = smov 0  }
   0x6   :  { %s2642_s16 = smov 0   ;;  %s2644_s17 = smov 0  }
   0x7 LB: > { %s1750_s18 = sadd.s32 4294967295, %s2603_s17   ;;  %s1751_s19 = sadd.s32 4294967294, %s2603_s17   ;;  %s2603_s17 = sphi %s2644_s17, %s20_s17   ;;  %s2599_s16 = sphi %s2642_s16, %s3003_s16   ;;  %s2595_s15 = sphi %s2640_s15, %s3002_s15   ;;  %s2591_s14 = sphi %s2638_s14, %s3001_s14   ;;  %s2587_s13 = sphi %s2636_s13, %s3000_s13   ;;  %s2583_s12 = sphi %s2634_s12, %s2999_s12  }
   0x8   : > { %p61_p0 = scmp.ne.s32.totalorder %s2587_s13, %s2583_s12  ;;  %p2668_p1 = scmp.eq.s32.totalorder %s1750_s18, 0 }
   0x9   : > { %p2672_p2 = scmp.eq.s32.totalorder %s1750_s18, 1  ;;  %p147_p3 = scmp.eq.s32.totalorder %s1751_s19, 1 }
   0xa   : > { %s2984_s20 = scalar_select %p2668_p1, 1, 0 }
   0xb   : > { %s2985_s21 = scalar_select %p2672_p2, 1, 0 }
   0xc   : > { %p2678_p4 = por %p2668_p1, %p61_p0  ;;  %p1752_p5 = scmp.ge.s32.totalorder %s2603_s17, 1 }
   0xd   : > { %p2683_p6 = por %p147_p3, %p61_p0  ;;  %p154_p7 = scmp.lt.s32.totalorder %s2603_s17, 3 }
   0xe   : > { %s2986_s22 = scalar_select %p2678_p4, 1, 0 }
   0xf   : > { %s2987_s23 = scalar_select %p2683_p6, 1, 0 }
  0x10   : > { %p2688_p8 = pnand %p1752_p5, %p154_p7  ;;  %s2605_s25 = smov [#allocation6]  }
  0x11   : > { %s170_s26 = sshll.u32 %s2605_s25, 4  ;;  %s39_s28 = sadd.s32 1, %s2599_s16  ;;  %s171_s26 = int_to_ptr.vmem [resolvable:$true] %s170_s26 }
  0x12   : > { %s2988_s24 = scalar_select %p2688_p8, 1, 0 }
  0x13   : > { %p2260_p9 = pneg %p2688_p8  ;;  %s2459_s4 = scalar_lea.hbm %s2977_s1, 4096 }
  0x14   : > { %p2460_p12 = scmp.ne.s32.totalorder %s2977_s1, %s2459_s4  ;;  %p2466_p5 = scmp.lt.u32.totalorder %s2459_s4, %s2977_s1 }
  0x15   : > { %p2697_p11 = pnand %p2260_p9, %p2668_p1 }
  0x17   : > { %p2461_p13 = pneg %p2697_p11 }
  0x19   : > { %p2462_p0 = pnand %p2461_p13, %p2460_p12 }
  0x1b   : > { %p2463_p3 = pneg %p2462_p0 }
  0x1d   : > { %p2468_p7 = pnand %p2466_p5, %p2463_p3 }
  0x1f   : > { %2471 = shalt.err (!%p2468_p7)
}
  0x20   : > { %s2472_s9 = scalar_lea.vmem %s171_s26, 4096  ;;  %p2480_p1 = scmp.lt.s32.totalorder %s171_s26, %s171_s26 }
  0x21   : > { %p2473_p9 = scmp.ne.s32.totalorder %s171_s26, %s2472_s9  ;;  %p2481_p4 = scmp.lt.s32.totalorder %s2472_s9, %s2472_s9 }
  0x23   : > { %p2475_p10 = pnand %p2473_p9, %p2461_p13  ;;  %p2482_p8 = por %p2481_p4, %p2480_p1 }
  0x25   : > { %p2476_p6 = pneg %p2475_p10 }
  0x27   : > { %p2483_p2 = pnand %p2482_p8, %p2476_p6 }
  0x29   : > { %2486 = shalt.err (!%p2483_p2)
}
  0x2a   : > { %s2606_s10 = smov 64   ;;  %s2607_s11 = smov 4  }
  0x2b   : > { %2263 = dma.hbm_to_vmem [thread:$0]  (!%p2697_p11), %s2977_s1, 4096, %s171_s26, [#allocation7], %s2606_s10, %s2606_s10, %s2607_s11  }
  0x2c   : > { %p41_p1 = scmp.ge.s32.totalorder %s39_s28, 2  ;;  %s48_s25 = sadd.s32 1, %s2591_s14 }
  0x2d   : > { %p55_p2 = scmp.ne.s32.totalorder %s2591_s14, %s2587_s13  ;;  %p56_p4 = scmp.eq.s32.totalorder %s2603_s17, 0 }
  0x2e   : > { %s3005_s28 = smov (%p41_p1, %s39_s28), 0  ;;  %p2991_p8 = scmp.ne.s32.totalorder %s2985_s21, 0 }
  0x2f   : > { %p2724_p6 = por %p56_p4, %p55_p2  ;;  %s43_s27 = ssub.s32 %s2599_s16, %s3005_s28 }
  0x30   : > { %p2730_p10 = por %p2991_p8, %p55_p2  ;;  %p2273_p12 = scmp.lt.s32.totalorder %s2603_s17, 2 }
  0x31   : > { %p46_p11 = scmp.eq.s32.totalorder %s43_s27, 0  ;;  %s190_s26 = sand.u32 1, %s2591_s14  }
  0x32   : > { %s1756_s4 = sshll.u32 %s190_s26, 9  ;;  %s1899_s6 = sshll.u32 %s2599_s16, 13 }
  0x33   : > { %s2739_s5 = scalar_select %p46_p11, %s2591_s14, %s48_s25  }
  0x34   : > { %s2745_s9 = scalar_lea.hbm %s2976_s0, %s1899_s6  ;;  %s194_s21 = scalar_lea.vmem [#allocation3], %s1756_s4 }
  0x35   : > { %s204_s10 = sshll.u32 %s194_s21, 4  ;;  %p2751_p13 = pnand %p2273_p12, %p2724_p6  ;;  %s2747_s10 = int_to_ptr.vmem [resolvable:$true] %s204_s10 }
  0x36   : > { %s2755_s18 = scalar_lea.sflag [#allocation4], %s190_s26  ;;  %s2487_s19 = scalar_lea.hbm %s2745_s9, 8192 }
  0x37   : > { %p2488_p0 = scmp.ne.s32.totalorder %s2745_s9, %s2487_s19  ;;  %p2489_p3 = pneg %p2751_p13 }
  0x38   : > { %s2492_s29 = scalar_lea.hbm %s2976_s0, 16384  ;;  %p2493_p9 = scmp.lt.u32.totalorder %s2745_s9, %s2976_s0 }
  0x39   : > { %p2490_p5 = pnand %p2489_p3, %p2488_p0  ;;  %p2494_p1 = scmp.lt.u32.totalorder %s2492_s29, %s2487_s19 }
  0x3a   : > { %p2496_p4 = scmp.lt.u32.totalorder %s2487_s19, %s2745_s9 }
  0x3b   : > { %p2491_p7 = pneg %p2490_p5  ;;  %p2495_p2 = por %p2494_p1, %p2493_p9 }
  0x3d   : > { %p2497_p6 = por %p2496_p4, %p2495_p2 }
  0x3f   : > { %p2498_p8 = pnand %p2497_p6, %p2491_p7 }
  0x41   : > { %2501 = shalt.err (!%p2498_p8)
}
  0x42   : > { %s2502_s26 = scalar_lea.vmem %s2747_s10, 8192  ;;  %s2608_s7 = smov [#allocation3]  }
  0x43   : > { %p2503_p12 = scmp.ne.s32.totalorder %s2747_s10, %s2502_s26  ;;  %s2507_s8 = sshll.u32 %s2608_s7, 4  ;;  %s2508_s8 = int_to_ptr.vmem [resolvable:$false] %s2507_s8 }
  0x44   : > { %s2509_s21 = scalar_lea.vmem %s2508_s8, 16384  ;;  %p2510_p5 = scmp.lt.s32.totalorder %s2747_s10, %s2508_s8 }
  0x45   : > { %p2505_p11 = pnand %p2503_p12, %p2489_p3  ;;  %p2511_p9 = scmp.lt.s32.totalorder %s2509_s21, %s2502_s26 }
  0x47   : > { %p2506_p0 = pneg %p2505_p11  ;;  %p2512_p1 = por %p2511_p9, %p2510_p5 }
  0x49   : > { %p2513_p2 = pnand %p2512_p1, %p2506_p0 }
  0x4b   : > { %2516 = shalt.err (!%p2513_p2)
}
  0x4c   : > { %s2609_s19 = smov 256   ;;  %s2610_s25 = smov 16  }
  0x4d   : > { %2267 = dma.hbm_to_vmem [thread:$0]  (!%p2751_p13), %s2745_s9, 8192, %s2747_s10, %s2755_s18, %s2609_s19, %s2609_s19, %s2610_s25  }
  0x4e   : > { %p2994_p3 = scmp.ne.s32.totalorder %s2988_s24, 0 }
  0x4f   : > { %s2786_s27 = sand.u32 (!%p2994_p3), 1, %s2587_s13   ;;  %p2995_p7 = scmp.ne.s32.totalorder (!%p2994_p3), %s2986_s22, 0 }
  0x50   : > { %216 = sbr.rel (%p2994_p3) target bundleno = 486 (0x1e6), region = 32  ;;  %s1761_s29 = sshll.u32 (!%p2994_p3), %s2786_s27, 9 }
  0x51   : > { %s219_s4 = scalar_lea.sflag (!%p2994_p3), [#allocation4], %s2786_s27  ;;  %s2790_s6 = scalar_lea.vmem (!%p2994_p3), [#allocation3], %s1761_s29 }
  0x57   : > { %2570 = dma.done.wait (%p2995_p7), %s219_s4, 8192  }
  0x58   : > { %2572 = vsyncadd (%p2995_p7), %s219_s4, 4294959104  ;;  %p2996_p13 = scmp.ne.s32.totalorder %s2984_s20, 0 }
  0x5a   : > { %2574 = dma.done.wait (%p2996_p13), [#allocation7], 4096  }
  0x5b   : > { %2576 = vsyncadd (%p2996_p13), [#allocation7], 4294963200  ;;  %v2331_v0 = vld [vmem:[#allocation6 + $0x40] sm:$0xff]   ;;  %v2335_v4 = vld [vmem:[#allocation6 + $0x48] sm:$0xff]   ;;  %s1763_s24 = sshll.u32 %s2786_s27, 7  ;;  %s1932_s10 = sshll.u32 %s2595_s15, 11 }
  0x5c   : > { %v2332_v1 = vld [vmem:[#allocation6 + $0xc0] sm:$0xff]   ;;  %2028 = vmatprep.subr.bf16.mxu0 %v2331_v0  ;;  %v2336_v5 = vld [vmem:[#allocation6 + $0xc8] sm:$0xff]   ;;  %v2339_v8 = vld [vmem:[#allocation6 + $0x50] sm:$0xff]   ;;  %s2872_s9 = scalar_lea.vmem [#allocation8], %s1763_s24  ;;  %s2924_s7 = scalar_lea.hbm %s2979_s3, %s1932_s10 }
  0x5d   : > { %v2333_v2 = vld [vmem:[#allocation6] sm:$0xff]   ;;  %2140 = vmatprep.subr.bf16.mxu1 %v2332_v1  ;;  %v2337_v6 = vld [vmem:[#allocation6 + $0x8] sm:$0xff]   ;;  %v2340_v9 = vld [vmem:[#allocation6 + $0xd0] sm:$0xff]   ;;  %s1635_s11 = sshll.u32 %s2872_s9, 4  ;;  %s1621_s8 = scalar_lea.sflag [#allocation5], %s2786_s27  ;;  %s2926_s11 = int_to_ptr.vmem [resolvable:$true] %s1635_s11 }
  0x5e   : > { %v2334_v3 = vld [vmem:[#allocation6 + $0x80] sm:$0xff]   ;;  %2029 = vmatpush3.bf16.msra.mxu0 %v2333_v2  ;;  %v2338_v7 = vld [vmem:[#allocation6 + $0x88] sm:$0xff]   ;;  %v2341_v10 = vld [vmem:[#allocation6 + $0x10] sm:$0xff]   ;;  %s2517_s21 = scalar_lea.vmem %s2926_s11, 2048  ;;  %s2611_s15 = smov [#allocation8]  }
  0x5f   : > { %2141 = vmatpush3.bf16.msra.mxu1 %v2334_v3  ;;  %2030 = vmatprep.subr.bf16.mxu0 %v2335_v4  ;;  %v2342_v11 = vld [vmem:[#allocation6 + $0x90] sm:$0xff]   ;;  %v2343_v12 = vld [vmem:[#allocation6 + $0x58] sm:$0xff]   ;;  %v2347_v16 = vld [vmem:[#allocation6 + $0x60] sm:$0xff]   ;;  %p2518_p4 = scmp.ne.s32.totalorder %s2926_s11, %s2517_s21  ;;  %s2521_s19 = sshll.u32 %s2611_s15, 4  ;;  %s2522_s19 = int_to_ptr.vmem [resolvable:$false] %s2521_s19 }
  0x60   : > { %2142 = vmatprep.subr.bf16.mxu1 %v2336_v5  ;;  %v2344_v13 = vld [vmem:[#allocation6 + $0xd8] sm:$0xff]   ;;  %v2348_v17 = vld [vmem:[#allocation6 + $0xe0] sm:$0xff]   ;;  %v2351_v20 = vld [vmem:[#allocation6 + $0x68] sm:$0xff]   ;;  %s2523_s25 = scalar_lea.vmem %s2522_s19, 4096  ;;  %p2524_p12 = scmp.lt.s32.totalorder %s2926_s11, %s2522_s19 }
  0x61   : > { %v2345_v14 = vld [vmem:[#allocation6 + $0x18] sm:$0xff]   ;;  %v2349_v18 = vld [vmem:[#allocation6 + $0x20] sm:$0xff]   ;;  %v2352_v21 = vld [vmem:[#allocation6 + $0xe8] sm:$0xff]   ;;  %p2519_p6 = pnand %p2518_p4, %p2730_p10  ;;  %p2525_p11 = scmp.lt.s32.totalorder %s2523_s25, %s2517_s21 }
  0x62   : > { %2031 = vmatpush3.bf16.msra.mxu0 %v2337_v6  ;;  %v2346_v15 = vld [vmem:[#allocation6 + $0x98] sm:$0xff]   ;;  %v2350_v19 = vld [vmem:[#allocation6 + $0xa0] sm:$0xff]   ;;  %v2353_v22 = vld [vmem:[#allocation6 + $0x28] sm:$0xff]  }
  0x63   : > { %2143 = vmatpush3.bf16.msra.mxu1 %v2338_v7  ;;  %2032 = vmatprep.subr.bf16.mxu0 %v2339_v8  ;;  %v2354_v23 = vld [vmem:[#allocation6 + $0xa8] sm:$0xff]   ;;  %v2355_v24 = vld [vmem:[#allocation6 + $0x70] sm:$0xff]   ;;  %v2359_v28 = vld [vmem:[#allocation6 + $0x78] sm:$0xff]   ;;  %p2520_p8 = pneg %p2519_p6  ;;  %p2526_p0 = por %p2525_p11, %p2524_p12 }
  0x64   : > { %2144 = vmatprep.subr.bf16.mxu1 %v2340_v9  ;;  %v2356_v25 = vld [vmem:[#allocation6 + $0xf0] sm:$0xff]   ;;  %v2360_v29 = vld [vmem:[#allocation6 + $0xf8] sm:$0xff]  }
  0x65   : > { %v2357_v26 = vld [vmem:[#allocation6 + $0x30] sm:$0xff]   ;;  %v2361_v30 = vld [vmem:[#allocation6 + $0x38] sm:$0xff]   ;;  %p2527_p5 = pnand %p2526_p0, %p2520_p8 }
  0x66   : > { %2033 = vmatpush3.bf16.msra.mxu0 %v2341_v10  ;;  %v2358_v27 = vld [vmem:[#allocation6 + $0xb0] sm:$0xff]   ;;  %v2362_v31 = vld [vmem:[#allocation6 + $0xb8] sm:$0xff]  }
  0x67   : > { %2145 = vmatpush3.bf16.msra.mxu1 %v2342_v11  ;;  %2034 = vmatprep.subr.bf16.mxu0 %v2343_v12  ;;  %v2363_v32 = vld [vmem:[%s2790_s6] ss:$16 sps:$4 sm:$0xff]   ;;  %v2365_v33 = vld [vmem:[%s2790_s6 + $0x4] ss:$16 sps:$4 sm:$0xff]   ;;  %v2366_v34 = vld [vmem:[%s2790_s6 + $0x8] ss:$16 sps:$4 sm:$0xff]  }
  0x68   : > { %2146 = vmatprep.subr.bf16.mxu1 %v2344_v13  ;;  %v2368_v35 = vld [vmem:[%s2790_s6 + $0xc] ss:$16 sps:$4 sm:$0xff]   ;;  %1000 = vmatprep.mubr.bf16.mxu0 %v2365_v33  ;;  %v2369_v36 = vld [vmem:[%s2790_s6 + $0x24] ss:$16 sps:$4 sm:$0xff]   ;;  %v2373_v38 = vld [vmem:[%s2790_s6 + $0x20] ss:$16 sps:$4 sm:$0xff]  }
  0x69   : > { %1161 = vmatprep.mubr.bf16.mxu1 %v2368_v35  ;;  %v2371_v37 = vld [vmem:[%s2790_s6 + $0x2c] ss:$16 sps:$4 sm:$0xff]   ;;  %v2374_v39 = vld [vmem:[%s2790_s6 + $0x28] ss:$16 sps:$4 sm:$0xff]   ;;  %v2375_v40 = vld [vmem:[%s2790_s6 + $0x44] ss:$16 sps:$4 sm:$0xff]  }
  0x6a   : > { %2035 = vmatpush3.bf16.msra.mxu0 %v2345_v14  ;;  %v2377_v41 = vld [vmem:[%s2790_s6 + $0x4c] ss:$16 sps:$4 sm:$0xff]   ;;  %v2379_v42 = vld [vmem:[%s2790_s6 + $0x40] ss:$16 sps:$4 sm:$0xff]   ;;  %v2380_v43 = vld [vmem:[%s2790_s6 + $0x48] ss:$16 sps:$4 sm:$0xff]  }
  0x6b   : > { %2147 = vmatpush3.bf16.msra.mxu1 %v2346_v15  ;;  %2036 = vmatprep.subr.bf16.mxu0 %v2347_v16  ;;  %v2381_v44 = vld [vmem:[%s2790_s6 + $0x64] ss:$16 sps:$4 sm:$0xff]   ;;  %v2383_v45 = vld [vmem:[%s2790_s6 + $0x6c] ss:$16 sps:$4 sm:$0xff]   ;;  %v2385_v46 = vld [vmem:[%s2790_s6 + $0x60] ss:$16 sps:$4 sm:$0xff]  }
  0x6c   : > { %2148 = vmatprep.subr.bf16.mxu1 %v2348_v17  ;;  %v2386_v47 = vld [vmem:[%s2790_s6 + $0x68] ss:$16 sps:$4 sm:$0xff]   ;;  %v2387_v48 = vld [vmem:[%s2790_s6 + $0x84] ss:$16 sps:$4 sm:$0xff]   ;;  %v2389_v49 = vld [vmem:[%s2790_s6 + $0x8c] ss:$16 sps:$4 sm:$0xff]  }
  0x6d   : > { %v2391_v50 = vld [vmem:[%s2790_s6 + $0x80] ss:$16 sps:$4 sm:$0xff]   ;;  %v2392_v51 = vld [vmem:[%s2790_s6 + $0x88] ss:$16 sps:$4 sm:$0xff]   ;;  %v2393_v52 = vld [vmem:[%s2790_s6 + $0xa4] ss:$16 sps:$4 sm:$0xff]  }
  0x6e   : > { %2037 = vmatpush3.bf16.msra.mxu0 %v2349_v18  ;;  %v2395_v53 = vld [vmem:[%s2790_s6 + $0xac] ss:$16 sps:$4 sm:$0xff]   ;;  %v2397_v54 = vld [vmem:[%s2790_s6 + $0xa0] ss:$16 sps:$4 sm:$0xff]   ;;  %v2398_v55 = vld [vmem:[%s2790_s6 + $0xa8] ss:$16 sps:$4 sm:$0xff]  }
  0x6f   : > { %2149 = vmatpush3.bf16.msra.mxu1 %v2350_v19  ;;  %2038 = vmatprep.subr.bf16.mxu0 %v2351_v20  ;;  %v2399_v56 = vld [vmem:[%s2790_s6 + $0xc4] ss:$16 sps:$4 sm:$0xff]   ;;  %v2401_v57 = vld [vmem:[%s2790_s6 + $0xcc] ss:$16 sps:$4 sm:$0xff]   ;;  %v2403_v58 = vld [vmem:[%s2790_s6 + $0xc0] ss:$16 sps:$4 sm:$0xff]  }
  0x70   : > { %2150 = vmatprep.subr.bf16.mxu1 %v2352_v21  ;;  %v2404_v59 = vld [vmem:[%s2790_s6 + $0xc8] ss:$16 sps:$4 sm:$0xff]   ;;  %v2405_v60 = vld [vmem:[%s2790_s6 + $0xe4] ss:$16 sps:$4 sm:$0xff]   ;;  %v2407_v61 = vld [vmem:[%s2790_s6 + $0xec] ss:$16 sps:$4 sm:$0xff]  }
  0x71   : > { %v2409_v62 = vld [vmem:[%s2790_s6 + $0xe0] ss:$16 sps:$4 sm:$0xff]   ;;  %v2410_v63 = vld [vmem:[%s2790_s6 + $0xe8] ss:$16 sps:$4 sm:$0xff]   ;;  %v2411_v0 = vld [vmem:[%s2790_s6 + $0x104] ss:$16 sps:$4 sm:$0xff]  }
  0x72   : > { %2039 = vmatpush3.bf16.msra.mxu0 %v2353_v22  ;;  %v2413_v1 = vld [vmem:[%s2790_s6 + $0x10c] ss:$16 sps:$4 sm:$0xff]   ;;  %v2415_v2 = vld [vmem:[%s2790_s6 + $0x100] ss:$16 sps:$4 sm:$0xff]   ;;  %v2416_v3 = vld [vmem:[%s2790_s6 + $0x108] ss:$16 sps:$4 sm:$0xff]  }
  0x73   : > { %2151 = vmatpush3.bf16.msra.mxu1 %v2354_v23  ;;  %2040 = vmatprep.subr.bf16.mxu0 %v2355_v24  ;;  %v2417_v4 = vld [vmem:[%s2790_s6 + $0x124] ss:$16 sps:$4 sm:$0xff]   ;;  %v2419_v5 = vld [vmem:[%s2790_s6 + $0x12c] ss:$16 sps:$4 sm:$0xff]   ;;  %v2421_v6 = vld [vmem:[%s2790_s6 + $0x120] ss:$16 sps:$4 sm:$0xff]  }
  0x74   : > { %2152 = vmatprep.subr.bf16.mxu1 %v2356_v25  ;;  %v2422_v7 = vld [vmem:[%s2790_s6 + $0x128] ss:$16 sps:$4 sm:$0xff]   ;;  %v2423_v8 = vld [vmem:[%s2790_s6 + $0x144] ss:$16 sps:$4 sm:$0xff]   ;;  %v2425_v9 = vld [vmem:[%s2790_s6 + $0x14c] ss:$16 sps:$4 sm:$0xff]  }
  0x75   : > { %v2427_v10 = vld [vmem:[%s2790_s6 + $0x140] ss:$16 sps:$4 sm:$0xff]   ;;  %v2428_v11 = vld [vmem:[%s2790_s6 + $0x148] ss:$16 sps:$4 sm:$0xff]   ;;  %v2429_v12 = vld [vmem:[%s2790_s6 + $0x164] ss:$16 sps:$4 sm:$0xff]  }
  0x76   : > { %2041 = vmatpush3.bf16.msra.mxu0 %v2357_v26  ;;  %v2431_v13 = vld [vmem:[%s2790_s6 + $0x16c] ss:$16 sps:$4 sm:$0xff]   ;;  %v2433_v14 = vld [vmem:[%s2790_s6 + $0x160] ss:$16 sps:$4 sm:$0xff]   ;;  %v2434_v15 = vld [vmem:[%s2790_s6 + $0x168] ss:$16 sps:$4 sm:$0xff]  }
  0x77   : > { %2153 = vmatpush3.bf16.msra.mxu1 %v2358_v27  ;;  %2042 = vmatprep.subr.bf16.mxu0 %v2359_v28  ;;  %v2435_v16 = vld [vmem:[%s2790_s6 + $0x184] ss:$16 sps:$4 sm:$0xff]   ;;  %v2437_v17 = vld [vmem:[%s2790_s6 + $0x18c] ss:$16 sps:$4 sm:$0xff]   ;;  %v2439_v18 = vld [vmem:[%s2790_s6 + $0x180] ss:$16 sps:$4 sm:$0xff]  }
  0x78   : > { %2154 = vmatprep.subr.bf16.mxu1 %v2360_v29  ;;  %v2440_v19 = vld [vmem:[%s2790_s6 + $0x188] ss:$16 sps:$4 sm:$0xff]   ;;  %v2441_v20 = vld [vmem:[%s2790_s6 + $0x1a4] ss:$16 sps:$4 sm:$0xff]   ;;  %v2443_v21 = vld [vmem:[%s2790_s6 + $0x1ac] ss:$16 sps:$4 sm:$0xff]  }
  0x79   : > { %v2445_v22 = vld [vmem:[%s2790_s6 + $0x1a0] ss:$16 sps:$4 sm:$0xff]   ;;  %v2446_v23 = vld [vmem:[%s2790_s6 + $0x1a8] ss:$16 sps:$4 sm:$0xff]   ;;  %v2447_v24 = vld [vmem:[%s2790_s6 + $0x1c4] ss:$16 sps:$4 sm:$0xff]  }
  0x7a   : > { %2043 = vmatpush3.bf16.msra.mxu0 %v2361_v30  ;;  %v2449_v25 = vld [vmem:[%s2790_s6 + $0x1cc] ss:$16 sps:$4 sm:$0xff]   ;;  %v2451_v26 = vld [vmem:[%s2790_s6 + $0x1c0] ss:$16 sps:$4 sm:$0xff]   ;;  %v2452_v27 = vld [vmem:[%s2790_s6 + $0x1c8] ss:$16 sps:$4 sm:$0xff]  }
  0x7b   : > { %2155 = vmatpush3.bf16.msra.mxu1 %v2362_v31  ;;  %v2453_v28 = vld [vmem:[%s2790_s6 + $0x1e4] ss:$16 sps:$4 sm:$0xff]   ;;  %v2455_v29 = vld [vmem:[%s2790_s6 + $0x1ec] ss:$16 sps:$4 sm:$0xff]   ;;  %v2457_v30 = vld [vmem:[%s2790_s6 + $0x1e0] ss:$16 sps:$4 sm:$0xff]  }
  0x7c   : > { %v2458_v31 = vld [vmem:[%s2790_s6 + $0x1e8] ss:$16 sps:$4 sm:$0xff]  }
  0x7d   : > { %1001 = vmatmul.mubr.bf16.vlgmr.msra.gmra.mrb[0].mxu0 %v2363_v32 }
  0x7e   : > { %1162 = vmatmul.mubr.bf16.vlgmr.msra.gmra.mrb[0].mxu1 %v2366_v34  ;;  %1008 = vmatprep.mubr.bf16.mxu0 %v2369_v36 }
  0x7f   : > { %1169 = vmatprep.mubr.bf16.mxu1 %v2371_v37 }
  0x85   : > { %1009 = vmatmul.mubr.bf16.gmra.mrb[4].mxu0 %v2373_v38 }
  0x86   : > { %1170 = vmatmul.mubr.bf16.gmra.mrb[4].mxu1 %v2374_v39  ;;  %1016 = vmatprep.mubr.bf16.mxu0 %v2375_v40 }
  0x87   : > { %1177 = vmatprep.mubr.bf16.mxu1 %v2377_v41  ;;  %v2867_v41 = vld [vmem:[%s2978_s2] ss:$0 sm:$0xff] }
  0x8d   : > { %1017 = vmatmul.mubr.bf16.gmra.mrb[8].mxu0 %v2379_v42 }
  0x8e   : > { %1178 = vmatmul.mubr.bf16.gmra.mrb[8].mxu1 %v2380_v43  ;;  %1024 = vmatprep.mubr.bf16.mxu0 %v2381_v44 }
  0x8f   : > { %1185 = vmatprep.mubr.bf16.mxu1 %v2383_v45 }
  0x95   : > { %1025 = vmatmul.mubr.bf16.gmra.mrb[12].mxu0 %v2385_v46 }
  0x96   : > { %1186 = vmatmul.mubr.bf16.gmra.mrb[12].mxu1 %v2386_v47  ;;  %1032 = vmatprep.mubr.bf16.mxu0 %v2387_v48 }
  0x97   : > { %1193 = vmatprep.mubr.bf16.mxu1 %v2389_v49 }
  0x9d   : > { %1033 = vmatmul.mubr.bf16.gmra.mrb[16].mxu0 %v2391_v50 }
  0x9e   : > { %1194 = vmatmul.mubr.bf16.gmra.mrb[16].mxu1 %v2392_v51  ;;  %1040 = vmatprep.mubr.bf16.mxu0 %v2393_v52 }
  0x9f   : > { %1201 = vmatprep.mubr.bf16.mxu1 %v2395_v53 }
  0xa5   : > { %1041 = vmatmul.mubr.bf16.gmra.mrb[20].mxu0 %v2397_v54 }
  0xa6   : > { %1202 = vmatmul.mubr.bf16.gmra.mrb[20].mxu1 %v2398_v55  ;;  %1048 = vmatprep.mubr.bf16.mxu0 %v2399_v56 }
  0xa7   : > { %1209 = vmatprep.mubr.bf16.mxu1 %v2401_v57 }
  0xad   : > { %1049 = vmatmul.mubr.bf16.gmra.mrb[24].mxu0 %v2403_v58 }
  0xae   : > { %1210 = vmatmul.mubr.bf16.gmra.mrb[24].mxu1 %v2404_v59  ;;  %1056 = vmatprep.mubr.bf16.mxu0 %v2405_v60 }
  0xaf   : > { %1217 = vmatprep.mubr.bf16.mxu1 %v2407_v61 }
  0xb5   : > { %1057 = vmatmul.mubr.bf16.gmra.mrb[28].mxu0 %v2409_v62 }
  0xb6   : > { %1218 = vmatmul.mubr.bf16.gmra.mrb[28].mxu1 %v2410_v63  ;;  %1064 = vmatprep.mubr.bf16.mxu0 %v2411_v0 }
  0xb7   : > { %1225 = vmatprep.mubr.bf16.mxu1 %v2413_v1 }
  0xbd   : > { %1065 = vmatmul.mubr.bf16.gmra.mrb[32].mxu0 %v2415_v2 }
  0xbe   : > { %1226 = vmatmul.mubr.bf16.gmra.mrb[32].mxu1 %v2416_v3  ;;  %1072 = vmatprep.mubr.bf16.mxu0 %v2417_v4 }
  0xbf   : > { %1233 = vmatprep.mubr.bf16.mxu1 %v2419_v5 }
  0xc5   : > { %1073 = vmatmul.mubr.bf16.gmra.mrb[36].mxu0 %v2421_v6 }
  0xc6   : > { %1234 = vmatmul.mubr.bf16.gmra.mrb[36].mxu1 %v2422_v7  ;;  %1080 = vmatprep.mubr.bf16.mxu0 %v2423_v8 }
  0xc7   : > { %1241 = vmatprep.mubr.bf16.mxu1 %v2425_v9 }
  0xcd   : > { %1081 = vmatmul.mubr.bf16.gmra.mrb[40].mxu0 %v2427_v10 }
  0xce   : > { %1242 = vmatmul.mubr.bf16.gmra.mrb[40].mxu1 %v2428_v11  ;;  %1088 = vmatprep.mubr.bf16.mxu0 %v2429_v12 }
  0xcf   : > { %1249 = vmatprep.mubr.bf16.mxu1 %v2431_v13 }
  0xd5   : > { %1089 = vmatmul.mubr.bf16.gmra.mrb[44].mxu0 %v2433_v14 }
  0xd6   : > { %1250 = vmatmul.mubr.bf16.gmra.mrb[44].mxu1 %v2434_v15  ;;  %1096 = vmatprep.mubr.bf16.mxu0 %v2435_v16 }
  0xd7   : > { %1257 = vmatprep.mubr.bf16.mxu1 %v2437_v17 }
  0xdd   : > { %1097 = vmatmul.mubr.bf16.gmra.mrb[48].mxu0 %v2439_v18 }
  0xde   : > { %1258 = vmatmul.mubr.bf16.gmra.mrb[48].mxu1 %v2440_v19  ;;  %1104 = vmatprep.mubr.bf16.mxu0 %v2441_v20 }
  0xdf   : > { %1265 = vmatprep.mubr.bf16.mxu1 %v2443_v21 }
  0xe5   : > { %1105 = vmatmul.mubr.bf16.gmra.mrb[52].mxu0 %v2445_v22 }
  0xe6   : > { %1266 = vmatmul.mubr.bf16.gmra.mrb[52].mxu1 %v2446_v23  ;;  %1112 = vmatprep.mubr.bf16.mxu0 %v2447_v24 }
  0xe7   : > { %1273 = vmatprep.mubr.bf16.mxu1 %v2449_v25 }
  0xed   : > { %1113 = vmatmul.mubr.bf16.gmra.mrb[56].mxu0 %v2451_v26 }
  0xee   : > { %1274 = vmatmul.mubr.bf16.gmra.mrb[56].mxu1 %v2452_v27  ;;  %1120 = vmatprep.mubr.bf16.mxu0 %v2453_v28 }
  0xef   : > { %1281 = vmatprep.mubr.bf16.mxu1 %v2455_v29 }
  0xf5   : > { %1121 = vmatmul.mubr.bf16.gmra.mrb[60].mxu0 %v2457_v30 }
  0xf6   : > { %1282 = vmatmul.mubr.bf16.gmra.mrb[60].mxu1 %v2458_v31 }
 0x150   : > { %v2044_v32 = vpop.f32.mrb[0].mxu0 }
 0x151   : > { %v2156_v33 = vpop.f32.mrb[0].mxu1  ;;  %v2045_v34 = vpop.f32.mrb[1].mxu0 }
 0x152   : > { %v2046_v35 = vadd.f32 %v2045_v34, %v2044_v32  ;;  %v2157_v36 = vpop.f32.mrb[1].mxu1  ;;  %v2047_v37 = vpop.f32.mrb[2].mxu0 }
 0x153   : > { %v2158_v38 = vadd.f32 %v2157_v36, %v2156_v33  ;;  %v2159_v39 = vpop.f32.mrb[2].mxu1  ;;  %v2048_v40 = vpop.f32.mrb[3].mxu0 }
 0x154   : > { %v2049_v42 = vadd.f32 %v2048_v40, %v2047_v37  ;;  %v2160_v43 = vpop.f32.mrb[3].mxu1 }
 0x155   : > { %v1164_v44 = vadd.f32 %v2158_v38, %v2046_v35  ;;  %v2161_v45 = vadd.f32 %v2160_v43, %v2159_v39 }
 0x157   : > { %v1396_v46 = vadd.f32 %v2867_v41, %v1164_v44  ;;  %v1167_v47 = vadd.f32 %v2161_v45, %v2049_v42 }
 0x158   : > { %v2050_v48 = vpop.f32.mrb[4].mxu0 }
 0x159   : > { %v1397_v49 = vadd.f32 %v2867_v41, %v1167_v47  ;;  %v2162_v50 = vpop.f32.mrb[4].mxu1  ;;  %v2051_v51 = vpop.f32.mrb[5].mxu0  ;;  %v1428_v55 = vmax.f32 %v1396_v46, 0.0 }
 0x15a   : > { %v2052_v52 = vadd.f32 %v2051_v51, %v2050_v48  ;;  %v2163_v53 = vpop.f32.mrb[5].mxu1  ;;  %v2053_v54 = vpop.f32.mrb[6].mxu0 }
 0x15b   : > { %v1429_v56 = vmax.f32 %v1397_v49, 0.0  ;;  %v2164_v57 = vadd.f32 %v2163_v53, %v2162_v50  ;;  %v2165_v58 = vpop.f32.mrb[6].mxu1  ;;  %v2054_v59 = vpop.f32.mrb[7].mxu0 }
 0x15c   : > { %v2055_v60 = vadd.f32 %v2054_v59, %v2053_v54  ;;  %v2166_v61 = vpop.f32.mrb[7].mxu1 }
 0x15d   : > { %v1936_v62 = vpack.c.bf16 %v1429_v56, %v1428_v55  ;;  %v1172_v63 = vadd.f32 %v2164_v57, %v2052_v52  ;;  %v2167_v0 = vadd.f32 %v2166_v61, %v2165_v58 }
 0x15f   : > { %1937 = vst [vmem:[%s2872_s9] sm:$0xff] %v1936_v62   ;;  %v1398_v1 = vadd.f32 %v2867_v41, %v1172_v63  ;;  %v1175_v2 = vadd.f32 %v2167_v0, %v2055_v60 }
 0x160   : > { %v2056_v3 = vpop.f32.mrb[8].mxu0 }
 0x161   : > { %v1399_v4 = vadd.f32 %v2867_v41, %v1175_v2  ;;  %v2168_v5 = vpop.f32.mrb[8].mxu1  ;;  %v2057_v6 = vpop.f32.mrb[9].mxu0  ;;  %v1430_v10 = vmax.f32 %v1398_v1, 0.0 }
 0x162   : > { %v2058_v7 = vadd.f32 %v2057_v6, %v2056_v3  ;;  %v2169_v8 = vpop.f32.mrb[9].mxu1  ;;  %v2059_v9 = vpop.f32.mrb[10].mxu0 }
 0x163   : > { %v1431_v11 = vmax.f32 %v1399_v4, 0.0  ;;  %v2170_v12 = vadd.f32 %v2169_v8, %v2168_v5  ;;  %v2171_v13 = vpop.f32.mrb[10].mxu1  ;;  %v2060_v14 = vpop.f32.mrb[11].mxu0 }
 0x164   : > { %v2061_v15 = vadd.f32 %v2060_v14, %v2059_v9  ;;  %v2172_v16 = vpop.f32.mrb[11].mxu1 }
 0x165   : > { %v1941_v17 = vpack.c.bf16 %v1431_v11, %v1430_v10  ;;  %v1180_v18 = vadd.f32 %v2170_v12, %v2058_v7  ;;  %v2173_v19 = vadd.f32 %v2172_v16, %v2171_v13 }
 0x167   : > { %2013 = vst [vmem:[%s2872_s9 + $0x8] sm:$0xff] %v1941_v17   ;;  %v1400_v20 = vadd.f32 %v2867_v41, %v1180_v18  ;;  %v1183_v21 = vadd.f32 %v2173_v19, %v2061_v15 }
 0x168   : > { %v2062_v22 = vpop.f32.mrb[12].mxu0 }
 0x169   : > { %v1401_v23 = vadd.f32 %v2867_v41, %v1183_v21  ;;  %v2174_v24 = vpop.f32.mrb[12].mxu1  ;;  %v2063_v25 = vpop.f32.mrb[13].mxu0  ;;  %v1432_v29 = vmax.f32 %v1400_v20, 0.0 }
 0x16a   : > { %v2064_v26 = vadd.f32 %v2063_v25, %v2062_v22  ;;  %v2175_v27 = vpop.f32.mrb[13].mxu1  ;;  %v2065_v28 = vpop.f32.mrb[14].mxu0 }
 0x16b   : > { %v1433_v30 = vmax.f32 %v1401_v23, 0.0  ;;  %v2176_v31 = vadd.f32 %v2175_v27, %v2174_v24  ;;  %v2177_v32 = vpop.f32.mrb[14].mxu1  ;;  %v2066_v33 = vpop.f32.mrb[15].mxu0 }
 0x16c   : > { %v2067_v34 = vadd.f32 %v2066_v33, %v2065_v28  ;;  %v2178_v35 = vpop.f32.mrb[15].mxu1 }
 0x16d   : > { %v1946_v36 = vpack.c.bf16 %v1433_v30, %v1432_v29  ;;  %v1188_v37 = vadd.f32 %v2176_v31, %v2064_v26  ;;  %v2179_v38 = vadd.f32 %v2178_v35, %v2177_v32 }
 0x16f   : > { %2014 = vst [vmem:[%s2872_s9 + $0x10] sm:$0xff] %v1946_v36   ;;  %v1402_v39 = vadd.f32 %v2867_v41, %v1188_v37  ;;  %v1191_v40 = vadd.f32 %v2179_v38, %v2067_v34 }
 0x170   : > { %v2068_v42 = vpop.f32.mrb[16].mxu0 }
 0x171   : > { %v1403_v43 = vadd.f32 %v2867_v41, %v1191_v40  ;;  %v2180_v44 = vpop.f32.mrb[16].mxu1  ;;  %v2069_v45 = vpop.f32.mrb[17].mxu0  ;;  %v1434_v49 = vmax.f32 %v1402_v39, 0.0 }
 0x172   : > { %v2070_v46 = vadd.f32 %v2069_v45, %v2068_v42  ;;  %v2181_v47 = vpop.f32.mrb[17].mxu1  ;;  %v2071_v48 = vpop.f32.mrb[18].mxu0 }
 0x173   : > { %v1435_v50 = vmax.f32 %v1403_v43, 0.0  ;;  %v2182_v51 = vadd.f32 %v2181_v47, %v2180_v44  ;;  %v2183_v52 = vpop.f32.mrb[18].mxu1  ;;  %v2072_v53 = vpop.f32.mrb[19].mxu0 }
 0x174   : > { %v2073_v54 = vadd.f32 %v2072_v53, %v2071_v48  ;;  %v2184_v55 = vpop.f32.mrb[19].mxu1 }
 0x175   : > { %v1951_v56 = vpack.c.bf16 %v1435_v50, %v1434_v49  ;;  %v1196_v57 = vadd.f32 %v2182_v51, %v2070_v46  ;;  %v2185_v58 = vadd.f32 %v2184_v55, %v2183_v52 }
 0x177   : > { %2015 = vst [vmem:[%s2872_s9 + $0x18] sm:$0xff] %v1951_v56   ;;  %v1404_v59 = vadd.f32 %v2867_v41, %v1196_v57  ;;  %v1199_v60 = vadd.f32 %v2185_v58, %v2073_v54 }
 0x178   : > { %v2074_v61 = vpop.f32.mrb[20].mxu0 }
 0x179   : > { %v1405_v62 = vadd.f32 %v2867_v41, %v1199_v60  ;;  %v2186_v63 = vpop.f32.mrb[20].mxu1  ;;  %v2075_v0 = vpop.f32.mrb[21].mxu0  ;;  %v1436_v4 = vmax.f32 %v1404_v59, 0.0 }
 0x17a   : > { %v2076_v1 = vadd.f32 %v2075_v0, %v2074_v61  ;;  %v2187_v2 = vpop.f32.mrb[21].mxu1  ;;  %v2077_v3 = vpop.f32.mrb[22].mxu0 }
 0x17b   : > { %v1437_v5 = vmax.f32 %v1405_v62, 0.0  ;;  %v2188_v6 = vadd.f32 %v2187_v2, %v2186_v63  ;;  %v2189_v7 = vpop.f32.mrb[22].mxu1  ;;  %v2078_v8 = vpop.f32.mrb[23].mxu0 }
 0x17c   : > { %v2079_v9 = vadd.f32 %v2078_v8, %v2077_v3  ;;  %v2190_v10 = vpop.f32.mrb[23].mxu1 }
 0x17d   : > { %v1956_v11 = vpack.c.bf16 %v1437_v5, %v1436_v4  ;;  %v1204_v12 = vadd.f32 %v2188_v6, %v2076_v1  ;;  %v2191_v13 = vadd.f32 %v2190_v10, %v2189_v7 }
 0x17f   : > { %2016 = vst [vmem:[%s2872_s9 + $0x20] sm:$0xff] %v1956_v11   ;;  %v1406_v14 = vadd.f32 %v2867_v41, %v1204_v12  ;;  %v1207_v15 = vadd.f32 %v2191_v13, %v2079_v9 }
 0x180   : > { %v2080_v16 = vpop.f32.mrb[24].mxu0 }
 0x181   : > { %v1407_v17 = vadd.f32 %v2867_v41, %v1207_v15  ;;  %v2192_v18 = vpop.f32.mrb[24].mxu1  ;;  %v2081_v19 = vpop.f32.mrb[25].mxu0  ;;  %v1438_v23 = vmax.f32 %v1406_v14, 0.0 }
 0x182   : > { %v2082_v20 = vadd.f32 %v2081_v19, %v2080_v16  ;;  %v2193_v21 = vpop.f32.mrb[25].mxu1  ;;  %v2083_v22 = vpop.f32.mrb[26].mxu0 }
 0x183   : > { %v1439_v24 = vmax.f32 %v1407_v17, 0.0  ;;  %v2194_v25 = vadd.f32 %v2193_v21, %v2192_v18  ;;  %v2195_v26 = vpop.f32.mrb[26].mxu1  ;;  %v2084_v27 = vpop.f32.mrb[27].mxu0 }
 0x184   : > { %v2085_v28 = vadd.f32 %v2084_v27, %v2083_v22  ;;  %v2196_v29 = vpop.f32.mrb[27].mxu1 }
 0x185   : > { %v1961_v30 = vpack.c.bf16 %v1439_v24, %v1438_v23  ;;  %v1212_v31 = vadd.f32 %v2194_v25, %v2082_v20  ;;  %v2197_v32 = vadd.f32 %v2196_v29, %v2195_v26 }
 0x187   : > { %2017 = vst [vmem:[%s2872_s9 + $0x28] sm:$0xff] %v1961_v30   ;;  %v1408_v33 = vadd.f32 %v2867_v41, %v1212_v31  ;;  %v1215_v34 = vadd.f32 %v2197_v32, %v2085_v28 }
 0x188   : > { %v2086_v35 = vpop.f32.mrb[28].mxu0 }
 0x189   : > { %v1409_v36 = vadd.f32 %v2867_v41, %v1215_v34  ;;  %v2198_v37 = vpop.f32.mrb[28].mxu1  ;;  %v2087_v38 = vpop.f32.mrb[29].mxu0  ;;  %v1440_v43 = vmax.f32 %v1408_v33, 0.0 }
 0x18a   : > { %v2088_v39 = vadd.f32 %v2087_v38, %v2086_v35  ;;  %v2199_v40 = vpop.f32.mrb[29].mxu1  ;;  %v2089_v42 = vpop.f32.mrb[30].mxu0 }
 0x18b   : > { %v1441_v44 = vmax.f32 %v1409_v36, 0.0  ;;  %v2200_v45 = vadd.f32 %v2199_v40, %v2198_v37  ;;  %v2201_v46 = vpop.f32.mrb[30].mxu1  ;;  %v2090_v47 = vpop.f32.mrb[31].mxu0 }
 0x18c   : > { %v2091_v48 = vadd.f32 %v2090_v47, %v2089_v42  ;;  %v2202_v49 = vpop.f32.mrb[31].mxu1 }
 0x18d   : > { %v1966_v50 = vpack.c.bf16 %v1441_v44, %v1440_v43  ;;  %v1220_v51 = vadd.f32 %v2200_v45, %v2088_v39  ;;  %v2203_v52 = vadd.f32 %v2202_v49, %v2201_v46 }
 0x18f   : > { %2018 = vst [vmem:[%s2872_s9 + $0x30] sm:$0xff] %v1966_v50   ;;  %v1410_v53 = vadd.f32 %v2867_v41, %v1220_v51  ;;  %v1223_v54 = vadd.f32 %v2203_v52, %v2091_v48 }
 0x190   : > { %v2092_v55 = vpop.f32.mrb[32].mxu0 }
 0x191   : > { %v1411_v56 = vadd.f32 %v2867_v41, %v1223_v54  ;;  %v2204_v57 = vpop.f32.mrb[32].mxu1  ;;  %v2093_v58 = vpop.f32.mrb[33].mxu0  ;;  %v1442_v62 = vmax.f32 %v1410_v53, 0.0 }
 0x192   : > { %v2094_v59 = vadd.f32 %v2093_v58, %v2092_v55  ;;  %v2205_v60 = vpop.f32.mrb[33].mxu1  ;;  %v2095_v61 = vpop.f32.mrb[34].mxu0 }
 0x193   : > { %v1443_v63 = vmax.f32 %v1411_v56, 0.0  ;;  %v2206_v0 = vadd.f32 %v2205_v60, %v2204_v57  ;;  %v2207_v1 = vpop.f32.mrb[34].mxu1  ;;  %v2096_v2 = vpop.f32.mrb[35].mxu0 }
 0x194   : > { %v2097_v3 = vadd.f32 %v2096_v2, %v2095_v61  ;;  %v2208_v4 = vpop.f32.mrb[35].mxu1 }
 0x195   : > { %v1971_v5 = vpack.c.bf16 %v1443_v63, %v1442_v62  ;;  %v1228_v6 = vadd.f32 %v2206_v0, %v2094_v59  ;;  %v2209_v7 = vadd.f32 %v2208_v4, %v2207_v1 }
 0x197   : > { %2019 = vst [vmem:[%s2872_s9 + $0x38] sm:$0xff] %v1971_v5   ;;  %v1412_v8 = vadd.f32 %v2867_v41, %v1228_v6  ;;  %v1231_v9 = vadd.f32 %v2209_v7, %v2097_v3 }
 0x198   : > { %v2098_v10 = vpop.f32.mrb[36].mxu0 }
 0x199   : > { %v1413_v11 = vadd.f32 %v2867_v41, %v1231_v9  ;;  %v2210_v12 = vpop.f32.mrb[36].mxu1  ;;  %v2099_v13 = vpop.f32.mrb[37].mxu0  ;;  %v1444_v17 = vmax.f32 %v1412_v8, 0.0 }
 0x19a   : > { %v2100_v14 = vadd.f32 %v2099_v13, %v2098_v10  ;;  %v2211_v15 = vpop.f32.mrb[37].mxu1  ;;  %v2101_v16 = vpop.f32.mrb[38].mxu0 }
 0x19b   : > { %v1445_v18 = vmax.f32 %v1413_v11, 0.0  ;;  %v2212_v19 = vadd.f32 %v2211_v15, %v2210_v12  ;;  %v2213_v20 = vpop.f32.mrb[38].mxu1  ;;  %v2102_v21 = vpop.f32.mrb[39].mxu0 }
 0x19c   : > { %v2103_v22 = vadd.f32 %v2102_v21, %v2101_v16  ;;  %v2214_v23 = vpop.f32.mrb[39].mxu1 }
 0x19d   : > { %v1976_v24 = vpack.c.bf16 %v1445_v18, %v1444_v17  ;;  %v1236_v25 = vadd.f32 %v2212_v19, %v2100_v14  ;;  %v2215_v26 = vadd.f32 %v2214_v23, %v2213_v20 }
 0x19f   : > { %2020 = vst [vmem:[%s2872_s9 + $0x40] sm:$0xff] %v1976_v24   ;;  %v1414_v27 = vadd.f32 %v2867_v41, %v1236_v25  ;;  %v1239_v28 = vadd.f32 %v2215_v26, %v2103_v22 }
 0x1a0   : > { %v2104_v29 = vpop.f32.mrb[40].mxu0 }
 0x1a1   : > { %v1415_v30 = vadd.f32 %v2867_v41, %v1239_v28  ;;  %v2216_v31 = vpop.f32.mrb[40].mxu1  ;;  %v2105_v32 = vpop.f32.mrb[41].mxu0  ;;  %v1446_v36 = vmax.f32 %v1414_v27, 0.0 }
 0x1a2   : > { %v2106_v33 = vadd.f32 %v2105_v32, %v2104_v29  ;;  %v2217_v34 = vpop.f32.mrb[41].mxu1  ;;  %v2107_v35 = vpop.f32.mrb[42].mxu0 }
 0x1a3   : > { %v1447_v37 = vmax.f32 %v1415_v30, 0.0  ;;  %v2218_v38 = vadd.f32 %v2217_v34, %v2216_v31  ;;  %v2219_v39 = vpop.f32.mrb[42].mxu1  ;;  %v2108_v40 = vpop.f32.mrb[43].mxu0 }
 0x1a4   : > { %v2109_v42 = vadd.f32 %v2108_v40, %v2107_v35  ;;  %v2220_v43 = vpop.f32.mrb[43].mxu1 }
 0x1a5   : > { %v1981_v44 = vpack.c.bf16 %v1447_v37, %v1446_v36  ;;  %v1244_v45 = vadd.f32 %v2218_v38, %v2106_v33  ;;  %v2221_v46 = vadd.f32 %v2220_v43, %v2219_v39 }
 0x1a7   : > { %2021 = vst [vmem:[%s2872_s9 + $0x48] sm:$0xff] %v1981_v44   ;;  %v1416_v47 = vadd.f32 %v2867_v41, %v1244_v45  ;;  %v1247_v48 = vadd.f32 %v2221_v46, %v2109_v42 }
 0x1a8   : > { %v2110_v49 = vpop.f32.mrb[44].mxu0 }
 0x1a9   : > { %v1417_v50 = vadd.f32 %v2867_v41, %v1247_v48  ;;  %v2222_v51 = vpop.f32.mrb[44].mxu1  ;;  %v2111_v52 = vpop.f32.mrb[45].mxu0  ;;  %v1448_v56 = vmax.f32 %v1416_v47, 0.0 }
 0x1aa   : > { %v2112_v53 = vadd.f32 %v2111_v52, %v2110_v49  ;;  %v2223_v54 = vpop.f32.mrb[45].mxu1  ;;  %v2113_v55 = vpop.f32.mrb[46].mxu0 }
 0x1ab   : > { %v1449_v57 = vmax.f32 %v1417_v50, 0.0  ;;  %v2224_v58 = vadd.f32 %v2223_v54, %v2222_v51  ;;  %v2225_v59 = vpop.f32.mrb[46].mxu1  ;;  %v2114_v60 = vpop.f32.mrb[47].mxu0 }
 0x1ac   : > { %v2115_v61 = vadd.f32 %v2114_v60, %v2113_v55  ;;  %v2226_v62 = vpop.f32.mrb[47].mxu1 }
 0x1ad   : > { %v1986_v63 = vpack.c.bf16 %v1449_v57, %v1448_v56  ;;  %v1252_v0 = vadd.f32 %v2224_v58, %v2112_v53  ;;  %v2227_v1 = vadd.f32 %v2226_v62, %v2225_v59 }
 0x1af   : > { %2022 = vst [vmem:[%s2872_s9 + $0x50] sm:$0xff] %v1986_v63   ;;  %v1418_v2 = vadd.f32 %v2867_v41, %v1252_v0  ;;  %v1255_v3 = vadd.f32 %v2227_v1, %v2115_v61 }
 0x1b0   : > { %v2116_v4 = vpop.f32.mrb[48].mxu0 }
 0x1b1   : > { %v1419_v5 = vadd.f32 %v2867_v41, %v1255_v3  ;;  %v2228_v6 = vpop.f32.mrb[48].mxu1  ;;  %v2117_v7 = vpop.f32.mrb[49].mxu0  ;;  %v1450_v11 = vmax.f32 %v1418_v2, 0.0 }
 0x1b2   : > { %v2118_v8 = vadd.f32 %v2117_v7, %v2116_v4  ;;  %v2229_v9 = vpop.f32.mrb[49].mxu1  ;;  %v2119_v10 = vpop.f32.mrb[50].mxu0 }
 0x1b3   : > { %v1451_v12 = vmax.f32 %v1419_v5, 0.0  ;;  %v2230_v13 = vadd.f32 %v2229_v9, %v2228_v6  ;;  %v2231_v14 = vpop.f32.mrb[50].mxu1  ;;  %v2120_v15 = vpop.f32.mrb[51].mxu0 }
 0x1b4   : > { %v2121_v16 = vadd.f32 %v2120_v15, %v2119_v10  ;;  %v2232_v17 = vpop.f32.mrb[51].mxu1 }
 0x1b5   : > { %v1991_v18 = vpack.c.bf16 %v1451_v12, %v1450_v11  ;;  %v1260_v19 = vadd.f32 %v2230_v13, %v2118_v8  ;;  %v2233_v20 = vadd.f32 %v2232_v17, %v2231_v14 }
 0x1b7   : > { %2023 = vst [vmem:[%s2872_s9 + $0x58] sm:$0xff] %v1991_v18   ;;  %v1420_v21 = vadd.f32 %v2867_v41, %v1260_v19  ;;  %v1263_v22 = vadd.f32 %v2233_v20, %v2121_v16 }
 0x1b8   : > { %v2122_v23 = vpop.f32.mrb[52].mxu0 }
 0x1b9   : > { %v1421_v24 = vadd.f32 %v2867_v41, %v1263_v22  ;;  %v2234_v25 = vpop.f32.mrb[52].mxu1  ;;  %v2123_v26 = vpop.f32.mrb[53].mxu0  ;;  %v1452_v30 = vmax.f32 %v1420_v21, 0.0 }
 0x1ba   : > { %v2124_v27 = vadd.f32 %v2123_v26, %v2122_v23  ;;  %v2235_v28 = vpop.f32.mrb[53].mxu1  ;;  %v2125_v29 = vpop.f32.mrb[54].mxu0 }
 0x1bb   : > { %v1453_v31 = vmax.f32 %v1421_v24, 0.0  ;;  %v2236_v32 = vadd.f32 %v2235_v28, %v2234_v25  ;;  %v2237_v33 = vpop.f32.mrb[54].mxu1  ;;  %v2126_v34 = vpop.f32.mrb[55].mxu0 }
 0x1bc   : > { %v2127_v35 = vadd.f32 %v2126_v34, %v2125_v29  ;;  %v2238_v36 = vpop.f32.mrb[55].mxu1 }
 0x1bd   : > { %v1996_v37 = vpack.c.bf16 %v1453_v31, %v1452_v30  ;;  %v1268_v38 = vadd.f32 %v2236_v32, %v2124_v27  ;;  %v2239_v39 = vadd.f32 %v2238_v36, %v2237_v33 }
 0x1bf   : > { %2024 = vst [vmem:[%s2872_s9 + $0x60] sm:$0xff] %v1996_v37   ;;  %v1422_v40 = vadd.f32 %v2867_v41, %v1268_v38  ;;  %v1271_v42 = vadd.f32 %v2239_v39, %v2127_v35 }
 0x1c0   : > { %v2128_v43 = vpop.f32.mrb[56].mxu0 }
 0x1c1   : > { %v1423_v44 = vadd.f32 %v2867_v41, %v1271_v42  ;;  %v2240_v45 = vpop.f32.mrb[56].mxu1  ;;  %v2129_v46 = vpop.f32.mrb[57].mxu0  ;;  %v1454_v50 = vmax.f32 %v1422_v40, 0.0 }
 0x1c2   : > { %v2130_v47 = vadd.f32 %v2129_v46, %v2128_v43  ;;  %v2241_v48 = vpop.f32.mrb[57].mxu1  ;;  %v2131_v49 = vpop.f32.mrb[58].mxu0 }
 0x1c3   : > { %v1455_v51 = vmax.f32 %v1423_v44, 0.0  ;;  %v2242_v52 = vadd.f32 %v2241_v48, %v2240_v45  ;;  %v2243_v53 = vpop.f32.mrb[58].mxu1  ;;  %v2132_v54 = vpop.f32.mrb[59].mxu0 }
 0x1c4   : > { %v2133_v55 = vadd.f32 %v2132_v54, %v2131_v49  ;;  %v2244_v56 = vpop.f32.mrb[59].mxu1 }
 0x1c5   : > { %v2001_v57 = vpack.c.bf16 %v1455_v51, %v1454_v50  ;;  %v1276_v58 = vadd.f32 %v2242_v52, %v2130_v47  ;;  %v2245_v59 = vadd.f32 %v2244_v56, %v2243_v53 }
 0x1c7   : > { %2025 = vst [vmem:[%s2872_s9 + $0x68] sm:$0xff] %v2001_v57   ;;  %v1424_v60 = vadd.f32 %v2867_v41, %v1276_v58  ;;  %v1279_v61 = vadd.f32 %v2245_v59, %v2133_v55 }
 0x1c8   : > { %v2134_v62 = vpop.f32.mrb[60].mxu0 }
 0x1c9   : > { %v1425_v63 = vadd.f32 %v2867_v41, %v1279_v61  ;;  %v2246_v0 = vpop.f32.mrb[60].mxu1  ;;  %v2135_v1 = vpop.f32.mrb[61].mxu0  ;;  %v1456_v5 = vmax.f32 %v1424_v60, 0.0 }
 0x1ca   : > { %v2136_v2 = vadd.f32 %v2135_v1, %v2134_v62  ;;  %v2247_v3 = vpop.f32.mrb[61].mxu1  ;;  %v2137_v4 = vpop.f32.mrb[62].mxu0 }
 0x1cb   : > { %v1457_v6 = vmax.f32 %v1425_v63, 0.0  ;;  %v2248_v7 = vadd.f32 %v2247_v3, %v2246_v0  ;;  %v2249_v8 = vpop.f32.mrb[62].mxu1  ;;  %v2138_v9 = vpop.f32.mrb[63].mxu0 }
 0x1cc   : > { %v2139_v10 = vadd.f32 %v2138_v9, %v2137_v4  ;;  %v2250_v11 = vpop.f32.mrb[63].mxu1 }
 0x1cd   : > { %v2006_v12 = vpack.c.bf16 %v1457_v6, %v1456_v5  ;;  %v1284_v13 = vadd.f32 %v2248_v7, %v2136_v2  ;;  %v2251_v14 = vadd.f32 %v2250_v11, %v2249_v8 }
 0x1cf   : > { %2026 = vst [vmem:[%s2872_s9 + $0x70] sm:$0xff] %v2006_v12   ;;  %v1426_v15 = vadd.f32 %v2867_v41, %v1284_v13  ;;  %v1287_v16 = vadd.f32 %v2251_v14, %v2139_v10 }
 0x1d1   : > { %v1427_v17 = vadd.f32 %v2867_v41, %v1287_v16  ;;  %v1458_v18 = vmax.f32 %v1426_v15, 0.0 }
 0x1d3   : > { %v1459_v19 = vmax.f32 %v1427_v17, 0.0 }
 0x1d5   : > { %v2011_v20 = vpack.c.bf16 %v1459_v19, %v1458_v18 }
 0x1d7   : > { %2027 = vst [vmem:[%s2872_s9 + $0x78] sm:$0xff] %v2011_v20  }
 0x1d8   : > { %2530 = shalt.err (!%p2527_p5)
}
 0x1d9   : > { %s2531_s29 = scalar_lea.hbm %s2924_s7, 2048  ;;  %s2535_s20 = scalar_lea.hbm %s2979_s3, 4096 }
 0x1da   : > { %p2532_p9 = scmp.ne.s32.totalorder %s2924_s7, %s2531_s29  ;;  %p2536_p3 = scmp.lt.u32.totalorder %s2924_s7, %s2979_s3 }
 0x1db   : > { %p2537_p7 = scmp.lt.u32.totalorder %s2535_s20, %s2531_s29  ;;  %p2539_p4 = scmp.lt.u32.totalorder %s2531_s29, %s2924_s7 }
 0x1dc   : > { %p2533_p1 = pnand %p2532_p9, %p2730_p10 }
 0x1dd   : > { %p2538_p13 = por %p2537_p7, %p2536_p3 }
 0x1de   : > { %p2534_p2 = pneg %p2533_p1 }
 0x1df   : > { %p2540_p6 = por %p2539_p4, %p2538_p13 }
 0x1e1   : > { %p2541_p8 = pnand %p2540_p6, %p2534_p2 }
 0x1e3   : > { %2544 = shalt.err (!%p2541_p8)
}
 0x1e4   : > { %s2612_s9 = smov 64   ;;  %s2613_s10 = smov 4  }
 0x1e5   : > { %2258 = dma.vmem_to_hbm [thread:$0]  (%p2730_p10), %s2926_s11, 2048, %s2924_s7, %s1621_s8, %s2612_s9, %s2612_s9, %s2613_s10  }
 0x1e6 PF: > { %s1650_s18 = sand.u32 1, %s2583_s12   ;;  %p2997_p12 = scmp.ne.s32.totalorder %s2987_s23, 0 }
 0x1e7   : > { %p2998_p11 = scmp.ge.s32.totalorder %s2603_s17, 2  ;;  %s1651_s26 = scalar_lea.sflag [#allocation5], %s1650_s18 }
 0x1e9   : > { %p2269_p0 = pnand %p2998_p11, %p2997_p12 }
 0x1eb   : > { %2578 = dma.done.wait (!%p2269_p0), %s1651_s26, 2048  }
 0x1ec   : > { %2580 = vsyncadd (!%p2269_p0), %s1651_s26, 4294965248  ;;  %s20_s17 = sadd.s32 1, %s2603_s17   ;;  %s2999_s12 = smov %s2587_s13 }
 0x1ed   : > { %p17_p5 = scmp.ge.s32.totalorder %s20_s17, 4   ;;  %s3000_s13 = smov %s2591_s14 }
 0x1ee   : > { %s3001_s14 = smov %s2739_s5  ;;  %s3002_s15 = smov %s2599_s16 }
 0x1ef   : > { %s3003_s16 = smov %s3005_s28  ;;  %19 = sbr.rel (!%p17_p5) target bundleno = 7 (0x7), region = 93 }
 0x1f6   :  { %1656 = vsyncpa [#allocation4], 1 }
 0x1f7   :  { %1658 = vsyncpa [#allocation4 + $0x1], 1 }
 0x1f8   :  { %1659 = vsyncpa [#allocation7], 1 }
 0x1f9   :  { %1660 = vsyncpa [#allocation5], 1 }
 0x1fa   :  { %1662 = vsyncpa [#allocation5 + $0x1], 1 }

</bundles_post_ra>
